<compile_context>
chip_gen: v5e
topology: v5e:2x2
jax: 0.10.0
libtpu: 0.0.40
codegen_flags: <defaults>
</compile_context>

<pallas_src>
import jax
import jax.numpy as jnp
from jax.experimental import pallas as pl
from jax.experimental.pallas import tpu as pltpu

IN_DIM = 10          # model input features
HIDDEN = 64          # model hidden features
OUT_DIM = 5          # model output features
LANE = 128           # lane-padded feature width used inside the kernel
ONE_COL = LANE - 1   # lane carrying the constant 1.0 "bias channel"
MAX_TB = 2048        # cap on the batch tile (VMEM footprint stays a few MB)


def mlp_kernel(x_ref, w1_ref, b1_ref, w2_ref, w3_ref, o_ref):
    """One batch tile of the 3-layer MLP; hidden dims are 128-wide."""
    x = x_ref[...]                                            # (tb, 10)

    # Layer 1: Linear(10 -> 64, padded to 128) + ReLU.
    # The (1,128) bias row adds b1 AND sets lane ONE_COL to 1.0, so after ReLU
    # h1[:, ONE_COL] == 1 -- the "ones channel" used to inject b2/b3 below.
    h1 = jnp.dot(x, w1_ref[...], preferred_element_type=jnp.float32) + b1_ref[...]
    h1 = jnp.maximum(h1, 0.0)                                 # (tb, 128)

    # Layer 2: Linear(64 -> 64) + ReLU. b2 lives in W2 row ONE_COL, and
    # W2[ONE_COL, ONE_COL] == 1 propagates the ones channel.
    h2 = jnp.maximum(
        jnp.dot(h1, w2_ref[...], preferred_element_type=jnp.float32), 0.0)

    # Layer 3: Linear(64 -> 5). b3 lives in W3 row ONE_COL. Output block is
    # only OUT_DIM columns wide (no padded writeback).
    out = jnp.dot(h2, w3_ref[...], preferred_element_type=jnp.float32)
    o_ref[...] = out.astype(o_ref.dtype)


def pack_params(params, dtype=jnp.float32):
    """Pad weights to lane-dense shapes and fold b2/b3 in via a ones channel.

    Zero padding is exact: padded input rows of a weight matrix only multiply
    zero activations, padded output columns get zero weight and zero bias, and
    ReLU keeps them at zero. Lane ONE_COL of h1/h2 is forced to 1.0 so that
    W2/W3 row ONE_COL acts as the bias of layers 2 and 3.
    """
    w1, b1, w2, b2, w3, b3 = params

    w1p = jnp.zeros((IN_DIM, LANE), dtype).at[:, :HIDDEN].set(w1.astype(dtype))

    b1row = (jnp.zeros((1, LANE), dtype)
             .at[0, :HIDDEN].set(b1.reshape(-1).astype(dtype))
             .at[0, ONE_COL].set(1.0))

    w2p = (jnp.zeros((LANE, LANE), dtype)
           .at[:HIDDEN, :HIDDEN].set(w2.astype(dtype))
           .at[ONE_COL, :HIDDEN].set(b2.reshape(-1).astype(dtype))
           .at[ONE_COL, ONE_COL].set(1.0))

    w3p = (jnp.zeros((LANE, OUT_DIM), dtype)
           .at[:HIDDEN, :].set(w3.astype(dtype))
           .at[ONE_COL, :].set(b3.reshape(-1).astype(dtype)))

    return w1p, b1row, w2p, w3p


def net_forward(x, packed_params, *, tb=None):
    """3-layer MLP forward pass as a single batch-tiled Pallas kernel."""
    w1p, b1row, w2p, w3p = packed_params
    batch = x.shape[0]

    if tb is None:
        # As large as possible to amortize per-step overhead, but keep >= 2
        # tiles (v7x has 2 TensorCores sharing the 'parallel' batch axis) and
        # cap at MAX_TB; VMEM per tile is only a few MB.
        tb = min(MAX_TB, max(8, (((batch + 7) // 8) * 8) // 2))
    tb = max(8, (tb // 8) * 8)       # f32 sublane multiple

    n_tiles = pl.cdiv(batch, tb)
    padded_batch = n_tiles * tb
    if padded_batch != batch:
        x = jnp.pad(x, ((0, padded_batch - batch), (0, 0)))

    itemsize = jnp.dtype(x.dtype).itemsize
    w_itemsize = jnp.dtype(w1p.dtype).itemsize
    weight_bytes = (w1p.size + b1row.size + w2p.size + w3p.size) * w_itemsize
    cost = pl.CostEstimate(
        flops=2 * padded_batch * (IN_DIM * LANE + LANE * LANE + LANE * OUT_DIM),
        transcendentals=0,
        bytes_accessed=(padded_batch * IN_DIM * itemsize
                        + padded_batch * OUT_DIM * itemsize
                        + weight_bytes),
    )

    out = pl.pallas_call(
        mlp_kernel,
        out_shape=jax.ShapeDtypeStruct((padded_batch, OUT_DIM), x.dtype),
        grid=(n_tiles,),
        in_specs=[
            # x: one (tb, 10) batch tile per grid step (software-pipelined).
            pl.BlockSpec((tb, IN_DIM), lambda i: (i, 0)),
            # Weights / bias row: constant block index -> VMEM-resident.
            pl.BlockSpec(w1p.shape, lambda i: (0, 0)),
            pl.BlockSpec(b1row.shape, lambda i: (0, 0)),
            pl.BlockSpec(w2p.shape, lambda i: (0, 0)),
            pl.BlockSpec(w3p.shape, lambda i: (0, 0)),
        ],
        # Narrow (tb, 5) output tile: ~25x fewer HBM bytes than a lane-padded
        # (tb, 128) writeback, and no post-kernel column slice.
        out_specs=pl.BlockSpec((tb, OUT_DIM), lambda i: (i, 0)),
        compiler_params=pltpu.CompilerParams(
            dimension_semantics=("parallel",),
        ),
        cost_estimate=cost,
    )(x, w1p, b1row, w2p, w3p)

    if padded_batch != batch:
        out = out[:batch]
    return out


def init_params(key, input_dim=IN_DIM, hidden=HIDDEN, output_dim=OUT_DIM,
                dtype=jnp.float32):
    """Deterministic init mimicking nn.Linear's U(-1/sqrt(fan_in), 1/sqrt(fan_in))."""
    def linear(k, fan_in, fan_out):
        kw, kb = jax.random.split(k)
        bound = 1.0 / jnp.sqrt(jnp.asarray(fan_in, dtype))
        w = jax.random.uniform(kw, (fan_in, fan_out), dtype, -bound, bound)
        b = jax.random.uniform(kb, (1, fan_out), dtype, -bound, bound)
        return w, b

    k1, k2, k3 = jax.random.split(key, 3)
    w1, b1 = linear(k1, input_dim, hidden)
    w2, b2 = linear(k2, hidden, hidden)
    w3, b3 = linear(k3, hidden, output_dim)
    return (w1, b1, w2, b2, w3, b3)


def reference_forward(x, params):
    """Pure-JAX reference (unpadded, highest matmul precision)."""
    w1, b1, w2, b2, w3, b3 = params
    hp = jax.lax.Precision.HIGHEST
    h1 = jnp.maximum(jnp.dot(x, w1, precision=hp) + b1, 0.0)
    h2 = jnp.maximum(jnp.dot(h1, w2, precision=hp) + b2, 0.0)
    return jnp.dot(h2, w3, precision=hp) + b3


if __name__ == "__main__":
    key = jax.random.PRNGKey(0)
    k_params, k_x = jax.random.split(key)

    batch = 256
    params = init_params(k_params)
    packed = pack_params(params)                 # f32; pass dtype=jnp.bfloat16 for v6e/v7x DMA savings
    x = jax.random.normal(k_x, (batch, IN_DIM), dtype=jnp.float32)

    out = net_forward(x, packed)                 # adaptive tb -> 2 tiles of 128 at batch=256
    out = jax.block_until_ready(out)

    ref = reference_forward(x, params)
    assert out.shape == (batch, OUT_DIM), out.shape
    assert jnp.allclose(out, ref, atol=1e-4, rtol=1e-4), "mismatch vs reference"

    print("KERNEL_OK")
</pallas_src>

<mosaic_0001>
module attributes {stable_mosaic.version = 11 : i64} {
  func.func @mlp_kernel(%arg0: i32, %arg1: memref<128x10xf32, #tpu.memory_space<vmem>>, %arg2: memref<10x128xf32, #tpu.memory_space<vmem>>, %arg3: memref<1x128xf32, #tpu.memory_space<vmem>>, %arg4: memref<128x128xf32, #tpu.memory_space<vmem>>, %arg5: memref<128x5xf32, #tpu.memory_space<vmem>>, %arg6: memref<128x5xf32, #tpu.memory_space<vmem>>) attributes {dimension_semantics = [#tpu.dimension_semantics<parallel>], iteration_bounds = array<i64: 2>, scalar_prefetch = 0 : i64, scratch_operands = 0 : i64, tpu.core_type = #tpu.core_type<tc>, window_params = [{transform_indices = @transform_0, window_bounds = array<i64: 128, 10>}, {pipeline_mode = #tpu.pipeline_mode<synchronous>, transform_indices = @transform_1, window_bounds = array<i64: 10, 128>}, {pipeline_mode = #tpu.pipeline_mode<synchronous>, transform_indices = @transform_2, window_bounds = array<i64: 1, 128>}, {pipeline_mode = #tpu.pipeline_mode<synchronous>, transform_indices = @transform_3, window_bounds = array<i64: 128, 128>}, {pipeline_mode = #tpu.pipeline_mode<synchronous>, transform_indices = @transform_4, window_bounds = array<i64: 128, 5>}, {transform_indices = @transform_5, window_bounds = array<i64: 128, 5>}]} {
    %c0 = arith.constant 0 : index
    %c0_0 = arith.constant 0 : index
    %0 = vector.load %arg1[%c0, %c0_0] : memref<128x10xf32, #tpu.memory_space<vmem>>, vector<128x10xf32>
    %c0_1 = arith.constant 0 : index
    %c0_2 = arith.constant 0 : index
    %1 = vector.load %arg2[%c0_1, %c0_2] : memref<10x128xf32, #tpu.memory_space<vmem>>, vector<10x128xf32>
    %cst = arith.constant dense<0.000000e+00> : vector<128x128xf32>
    %2 = tpu.matmul %0, %1, %cst {dimension_numbers = #tpu.dot_dimension_numbers<[1], [0], [0], [1], [0, 0, 1, 1], [], []>} : vector<128x10xf32>, vector<10x128xf32>, vector<128x128xf32> -> vector<128x128xf32>
    %c0_3 = arith.constant 0 : index
    %c0_4 = arith.constant 0 : index
    %3 = vector.load %arg3[%c0_3, %c0_4] : memref<1x128xf32, #tpu.memory_space<vmem>>, vector<1x128xf32>
    %4 = vector.broadcast %3 : vector<1x128xf32> to vector<128x128xf32>
    %5 = arith.addf %2, %4 : vector<128x128xf32>
    %cst_5 = arith.constant 0.000000e+00 : f32
    %6 = vector.broadcast %cst_5 : f32 to vector<128x128xf32>
    %7 = arith.maximumf %5, %6 : vector<128x128xf32>
    %c0_6 = arith.constant 0 : index
    %c0_7 = arith.constant 0 : index
    %8 = vector.load %arg4[%c0_6, %c0_7] : memref<128x128xf32, #tpu.memory_space<vmem>>, vector<128x128xf32>
    %cst_8 = arith.constant dense<0.000000e+00> : vector<128x128xf32>
    %9 = tpu.matmul %7, %8, %cst_8 {dimension_numbers = #tpu.dot_dimension_numbers<[1], [0], [0], [1], [0, 0, 1, 1], [], []>} : vector<128x128xf32>, vector<128x128xf32>, vector<128x128xf32> -> vector<128x128xf32>
    %cst_9 = arith.constant 0.000000e+00 : f32
    %10 = vector.broadcast %cst_9 : f32 to vector<128x128xf32>
    %11 = arith.maximumf %9, %10 : vector<128x128xf32>
    %c0_10 = arith.constant 0 : index
    %c0_11 = arith.constant 0 : index
    %12 = vector.load %arg5[%c0_10, %c0_11] : memref<128x5xf32, #tpu.memory_space<vmem>>, vector<128x5xf32>
    %cst_12 = arith.constant dense<0.000000e+00> : vector<128x5xf32>
    %13 = tpu.matmul %11, %12, %cst_12 {dimension_numbers = #tpu.dot_dimension_numbers<[1], [0], [0], [1], [0, 0, 1, 1], [], []>} : vector<128x128xf32>, vector<128x5xf32>, vector<128x5xf32> -> vector<128x5xf32>
    %c0_13 = arith.constant 0 : index
    %c0_14 = arith.constant 0 : index
    %14 = vector.load %arg6[%c0_13, %c0_14] : memref<128x5xf32, #tpu.memory_space<vmem>>, vector<128x5xf32>
    tpu.vector_store %arg6[%c0_13, %c0_14], %13 {strides = array<i32>} : memref<128x5xf32, #tpu.memory_space<vmem>>, vector<128x5xf32>,
    return
  }
  func.func @transform_0(%arg0: i32) -> (i32, i32) {
    %c0_i32 = arith.constant 0 : i32
    %c0_i32_0 = arith.constant 0 : i32
    return %arg0, %c0_i32 : i32, i32
  }
  func.func @transform_1(%arg0: i32) -> (i32, i32) {
    %c0_i32 = arith.constant 0 : i32
    %c0_i32_0 = arith.constant 0 : i32
    %c0_i32_1 = arith.constant 0 : i32
    return %c0_i32, %c0_i32_0 : i32, i32
  }
  func.func @transform_2(%arg0: i32) -> (i32, i32) {
    %c0_i32 = arith.constant 0 : i32
    %c0_i32_0 = arith.constant 0 : i32
    %c0_i32_1 = arith.constant 0 : i32
    return %c0_i32, %c0_i32_0 : i32, i32
  }
  func.func @transform_3(%arg0: i32) -> (i32, i32) {
    %c0_i32 = arith.constant 0 : i32
    %c0_i32_0 = arith.constant 0 : i32
    %c0_i32_1 = arith.constant 0 : i32
    return %c0_i32, %c0_i32_0 : i32, i32
  }
  func.func @transform_4(%arg0: i32) -> (i32, i32) {
    %c0_i32 = arith.constant 0 : i32
    %c0_i32_0 = arith.constant 0 : i32
    %c0_i32_1 = arith.constant 0 : i32
    return %c0_i32, %c0_i32_0 : i32, i32
  }
  func.func @transform_5(%arg0: i32) -> (i32, i32) {
    %c0_i32 = arith.constant 0 : i32
    %c0_i32_0 = arith.constant 0 : i32
    return %arg0, %c0_i32 : i32, i32
  }
}

</mosaic_0001>

<bundles_post_ra>
// kernel: tpu_custom_call.1
= control target key start
LH: loop header
LB: loop body
LE: loop exit
PB: predicated region body
PF: predicated region fallthrough
CT: control target
= control target key end

     0   :  { %s742_s18 = smov 0   ;;  %s957_s0 = inlined_call_operand.vmem [shape: f32[256,10], index: 0, kind: input, shape index: {}]   ;;  %s958_s1 = inlined_call_operand.vmem [shape: f32[10,128], index: 1, kind: input, shape index: {}]   ;;  %s959_s2 = inlined_call_operand.vmem [shape: f32[1,128], index: 2, kind: input, shape index: {}]   ;;  %s960_s3 = inlined_call_operand.vmem [shape: f32[128,128], index: 3, kind: input, shape index: {}]   ;;  %s961_s4 = inlined_call_operand.vmem [shape: f32[128,5], index: 4, kind: input, shape index: {}]   ;;  %s962_s5 = inlined_call_operand.vmem [shape: f32[256,5], index: 5, kind: output, shape index: {}]  }
   0x1 LB: > { %s635_s19 = sadd.s32 4294967295, %s710_s18   ;;  %p639_p0 = scmp.ge.s32.totalorder %s710_s18, 1  ;;  %s710_s18 = sphi %s742_s18, %s15_s18  }
   0x2   : > { %p188_p1 = scmp.lt.s32.totalorder %s710_s18, 3 }
   0x4   : > { %p189_p2 = pnand %p639_p0, %p188_p1 }
   0x5   : > { %s640_s24 = sshll.u32 (!%p189_p2), %s635_s19, 4 }
   0x6   : > { %192 = sbr.rel (%p189_p2) target bundleno = 532 (0x214), region = 40  ;;  %p217_p3 = scmp.lt.s32.totalorder (!%p189_p2), %s640_s24, 31 }
   0xb   : > { %v245_v0 = vld [vmem:[%s958_s1 + $0x8] sm:$0x3]  ;;  %vm299_vm0 = vcmask 1041408   ;;  %v244_v1 = vld [vmem:[%s958_s1] sm:$0xff]  ;;  %s964_s24 = smov (!%p217_p3, %s640_s24), 31  ;;  %vm250_vm1 = vcmask 80896  }
   0xc   : > { %644 = vmatpush.msk.msra.mxu0 %vm299_vm0, %v245_v0  ;;  %s641_s25 = sshll.u32 %s964_s24, 3  ;;  %v399_v11 = vld [vmem:[%s960_s3 + $0x78] sm:$0xff]  ;;  %v398_v12 = vld [vmem:[%s960_s3 + $0x70] sm:$0xff]  ;;  %v397_v13 = vld [vmem:[%s960_s3 + $0x68] sm:$0xff]  ;;  %vm562_vm2 = vcmask 39936  }
   0xd   : > { %s764_s28 = scalar_lea.vmem %s957_s0, %s641_s25  ;;  %400 = vmatpush.msra.mxu1 %v399_v11  ;;  %663 = vmatpush.msra.mxu3 %v399_v11  ;;  %v396_v15 = vld [vmem:[%s960_s3 + $0x60] sm:$0xff]  ;;  %v395_v16 = vld [vmem:[%s960_s3 + $0x58] sm:$0xff]  ;;  %v394_v17 = vld [vmem:[%s960_s3 + $0x50] sm:$0xff]  ;;  %s920_s7 = scalar_lea.vmem %s962_s5, %s641_s25 }
   0xe   : > { %318 = vmatpush.msra.mxu0 %v244_v1  ;;  %v228_v2 = vld [vmem:[%s764_s28] sm:$0xff]  ;;  %v229_v3 = vld [vmem:[%s764_s28 + $0x8] sm:$0xff]  ;;  %v230_v4 = vld [vmem:[%s764_s28 + $0x10] sm:$0xff] }
   0xf   : > { %645 = vmatmul.msk.f32.vlgmr.msra.gmra.mxu0 %vm250_vm1, %v228_v2  ;;  %v231_v5 = vld [vmem:[%s764_s28 + $0x18] sm:$0xff]  ;;  %v232_v6 = vld [vmem:[%s764_s28 + $0x20] sm:$0xff]  ;;  %v233_v7 = vld [vmem:[%s764_s28 + $0x28] sm:$0xff]  ;;  %401 = vmatpush.msra.mxu1 %v398_v12 }
  0x10   : > { %v234_v8 = vld [vmem:[%s764_s28 + $0x30] sm:$0xff]  ;;  %v235_v9 = vld [vmem:[%s764_s28 + $0x38] sm:$0xff]  ;;  %v236_v10 = vld [vmem:[%s764_s28 + $0x40] sm:$0xff]  ;;  %664 = vmatpush.msra.mxu3 %v398_v12 }
  0x11   : > { %v237_v14 = vld [vmem:[%s764_s28 + $0x48] sm:$0xff]  ;;  %402 = vmatpush.msra.mxu1 %v397_v13  ;;  %v238_v19 = vld [vmem:[%s764_s28 + $0x50] sm:$0xff]  ;;  %v392_v20 = vld [vmem:[%s960_s3 + $0x40] sm:$0xff] }
  0x12   : > { %665 = vmatpush.msra.mxu3 %v397_v13  ;;  %v393_v18 = vld [vmem:[%s960_s3 + $0x48] sm:$0xff]  ;;  %v391_v21 = vld [vmem:[%s960_s3 + $0x38] sm:$0xff]  ;;  %v390_v22 = vld [vmem:[%s960_s3 + $0x30] sm:$0xff] }
  0x13   : > { %403 = vmatpush.msra.mxu1 %v396_v15  ;;  %v389_v23 = vld [vmem:[%s960_s3 + $0x28] sm:$0xff]  ;;  %v239_v24 = vld [vmem:[%s764_s28 + $0x58] sm:$0xff]  ;;  %v388_v25 = vld [vmem:[%s960_s3 + $0x20] sm:$0xff] }
  0x14   : > { %666 = vmatpush.msra.mxu3 %v396_v15  ;;  %v387_v26 = vld [vmem:[%s960_s3 + $0x18] sm:$0xff]  ;;  %v386_v27 = vld [vmem:[%s960_s3 + $0x10] sm:$0xff]  ;;  %v240_v28 = vld [vmem:[%s764_s28 + $0x60] sm:$0xff] }
  0x15   : > { %404 = vmatpush.msra.mxu1 %v395_v16  ;;  %v385_v29 = vld [vmem:[%s960_s3 + $0x8] sm:$0xff]  ;;  %v384_v30 = vld [vmem:[%s960_s3] sm:$0xff]  ;;  %v242_v32 = vld [vmem:[%s764_s28 + $0x70] sm:$0xff] }
  0x16   : > { %667 = vmatpush.msra.mxu3 %v395_v16  ;;  %v241_v31 = vld [vmem:[%s764_s28 + $0x68] sm:$0xff]  ;;  %v243_v33 = vld [vmem:[%s764_s28 + $0x78] sm:$0xff]  ;;  %v849_v34 = vld [vmem:[%s959_s2] ss:$0 sm:$0xff] }
  0x17   : > { %646 = vmatmul.msk.f32.gmra.mxu0 %vm250_vm1, %v229_v3  ;;  %405 = vmatpush.msra.mxu1 %v394_v17  ;;  %v496_v62 = vld [vmem:[%s961_s4 + $0x78] sm:$0xff]  ;;  %v495_v63 = vld [vmem:[%s961_s4 + $0x70] sm:$0xff]  ;;  %v494_v2 = vld [vmem:[%s961_s4 + $0x68] sm:$0xff] }
  0x18   : > { %668 = vmatpush.msra.mxu3 %v394_v17  ;;  %497 = vmatpush.msra.mxu2 %v496_v62  ;;  %v489_v11 = vld [vmem:[%s961_s4 + $0x40] sm:$0xff]  ;;  %v488_v12 = vld [vmem:[%s961_s4 + $0x38] sm:$0xff]  ;;  %v487_v13 = vld [vmem:[%s961_s4 + $0x30] sm:$0xff] }
  0x19   : > { %406 = vmatpush.msra.mxu1 %v393_v18  ;;  %v486_v16 = vld [vmem:[%s961_s4 + $0x28] sm:$0xff] }
  0x1a   : > { %669 = vmatpush.msra.mxu3 %v393_v18  ;;  %498 = vmatpush.msra.mxu2 %v495_v63  ;;  %v485_v18 = vld [vmem:[%s961_s4 + $0x20] sm:$0xff] }
  0x1b   : > { %407 = vmatpush.msra.mxu1 %v392_v20 }
  0x1c   : > { %670 = vmatpush.msra.mxu3 %v392_v20  ;;  %499 = vmatpush.msra.mxu2 %v494_v2  ;;  %v483_v20 = vld [vmem:[%s961_s4 + $0x10] sm:$0xff] }
  0x1d   : > { %408 = vmatpush.msra.mxu1 %v391_v21 }
  0x1e   : > { %671 = vmatpush.msra.mxu3 %v391_v21 }
  0x1f   : > { %647 = vmatmul.msk.f32.gmra.mxu0 %vm250_vm1, %v230_v4  ;;  %409 = vmatpush.msra.mxu1 %v390_v22  ;;  %v493_v4 = vld [vmem:[%s961_s4 + $0x60] sm:$0xff] }
  0x20   : > { %672 = vmatpush.msra.mxu3 %v390_v22  ;;  %500 = vmatpush.msra.mxu2 %v493_v4 }
  0x21   : > { %410 = vmatpush.msra.mxu1 %v389_v23 }
  0x22   : > { %673 = vmatpush.msra.mxu3 %v389_v23  ;;  %v482_v23 = vld [vmem:[%s961_s4 + $0x8] sm:$0xff] }
  0x23   : > { %411 = vmatpush.msra.mxu1 %v388_v25 }
  0x24   : > { %674 = vmatpush.msra.mxu3 %v388_v25  ;;  %v481_v25 = vld [vmem:[%s961_s4] sm:$0xff] }
  0x25   : > { %412 = vmatpush.msra.mxu1 %v387_v26 }
  0x26   : > { %675 = vmatpush.msra.mxu3 %v387_v26 }
  0x27   : > { %648 = vmatmul.msk.f32.gmra.mxu0 %vm250_vm1, %v231_v5  ;;  %413 = vmatpush.msra.mxu1 %v386_v27  ;;  %v492_v5 = vld [vmem:[%s961_s4 + $0x58] sm:$0xff] }
  0x28   : > { %676 = vmatpush.msra.mxu3 %v386_v27  ;;  %501 = vmatpush.msra.mxu2 %v492_v5 }
  0x29   : > { %414 = vmatpush.msra.mxu1 %v385_v29 }
  0x2a   : > { %677 = vmatpush.msra.mxu3 %v385_v29 }
  0x2b   : > { %415 = vmatpush.msra.mxu1 %v384_v30 }
  0x2c   : > { %678 = vmatpush.msra.mxu3 %v384_v30 }
  0x2e   : > { %679 = vmatpush.msrb.mxu3 %v496_v62 }
  0x2f   : > { %649 = vmatmul.msk.f32.gmra.mxu0 %vm250_vm1, %v232_v6  ;;  %v491_v6 = vld [vmem:[%s961_s4 + $0x50] sm:$0xff] }
  0x30   : > { %680 = vmatpush.msrb.mxu3 %v495_v63  ;;  %502 = vmatpush.msra.mxu2 %v491_v6 }
  0x32   : > { %681 = vmatpush.msrb.mxu3 %v494_v2 }
  0x34   : > { %682 = vmatpush.msrb.mxu3 %v493_v4 }
  0x36   : > { %683 = vmatpush.msrb.mxu3 %v492_v5 }
  0x37   : > { %650 = vmatmul.msk.f32.gmra.mxu0 %vm250_vm1, %v233_v7 }
  0x38   : > { %684 = vmatpush.msrb.mxu3 %v491_v6 }
  0x3f   : > { %651 = vmatmul.msk.f32.gmra.mxu0 %vm250_vm1, %v234_v8 }
  0x47   : > { %652 = vmatmul.msk.f32.gmra.mxu0 %vm250_vm1, %v235_v9  ;;  %v490_v9 = vld [vmem:[%s961_s4 + $0x48] sm:$0xff] }
  0x48   : > { %503 = vmatpush.msra.mxu2 %v490_v9  ;;  %685 = vmatpush.msrb.mxu3 %v490_v9 }
  0x4a   : > { %504 = vmatpush.msra.mxu2 %v489_v11  ;;  %686 = vmatpush.msrb.mxu3 %v489_v11 }
  0x4c   : > { %505 = vmatpush.msra.mxu2 %v488_v12  ;;  %687 = vmatpush.msrb.mxu3 %v488_v12 }
  0x4e   : > { %506 = vmatpush.msra.mxu2 %v487_v13  ;;  %688 = vmatpush.msrb.mxu3 %v487_v13 }
  0x4f   : > { %653 = vmatmul.msk.f32.gmra.mxu0 %vm250_vm1, %v236_v10 }
  0x50   : > { %507 = vmatpush.msra.mxu2 %v486_v16  ;;  %689 = vmatpush.msrb.mxu3 %v486_v16 }
  0x52   : > { %508 = vmatpush.msra.mxu2 %v485_v18  ;;  %690 = vmatpush.msrb.mxu3 %v485_v18 }
  0x57   : > { %654 = vmatmul.msk.f32.gmra.mxu0 %vm250_vm1, %v237_v14 }
  0x5f   : > { %655 = vmatmul.msk.f32.gmra.mxu0 %vm250_vm1, %v238_v19  ;;  %v484_v19 = vld [vmem:[%s961_s4 + $0x18] sm:$0xff] }
  0x60   : > { %509 = vmatpush.msra.mxu2 %v484_v19  ;;  %691 = vmatpush.msrb.mxu3 %v484_v19 }
  0x62   : > { %510 = vmatpush.msra.mxu2 %v483_v20  ;;  %692 = vmatpush.msrb.mxu3 %v483_v20 }
  0x64   : > { %511 = vmatpush.msra.mxu2 %v482_v23  ;;  %693 = vmatpush.msrb.mxu3 %v482_v23 }
  0x66   : > { %512 = vmatpush.msra.mxu2 %v481_v25  ;;  %694 = vmatpush.msrb.mxu3 %v481_v25 }
  0x67   : > { %656 = vmatmul.msk.f32.gmra.mxu0 %vm250_vm1, %v239_v24 }
  0x6f   : > { %657 = vmatmul.msk.f32.gmra.mxu0 %vm250_vm1, %v240_v28 }
  0x77   : > { %658 = vmatmul.msk.f32.gmra.mxu0 %vm250_vm1, %v241_v31 }
  0x7f   : > { %659 = vmatmul.msk.f32.gmra.mxu0 %vm250_vm1, %v242_v32 }
  0x87   : > { %660 = vmatmul.msk.f32.gmra.mxu0 %vm250_vm1, %v243_v33 }
  0x8c   : > { %v320_v35 = vpop.f32.mrf.mxu0 }
  0x8d   : > { %v321_v36 = vadd.f32 %v849_v34, %v320_v35 }
  0x8f   : > { %v368_v37 = vmax.f32 %v321_v36, 0.0 }
  0x91   : > { %416 = vmatmul.f32.vlgmr.msra.gmra.mxu1 %v368_v37 }
  0x94   : > { %v323_v38 = vpop.f32.mrf.mxu0 }
  0x95   : > { %v324_v39 = vadd.f32 %v849_v34, %v323_v38 }
  0x97   : > { %v369_v40 = vmax.f32 %v324_v39, 0.0 }
  0x99   : > { %419 = vmatmul.f32.gmra.mxu1 %v369_v40 }
  0x9c   : > { %v326_v41 = vpop.f32.mrf.mxu0 }
  0x9d   : > { %v327_v42 = vadd.f32 %v849_v34, %v326_v41 }
  0x9f   : > { %v370_v43 = vmax.f32 %v327_v42, 0.0 }
  0xa1   : > { %422 = vmatmul.f32.gmra.mxu1 %v370_v43 }
  0xa4   : > { %v329_v44 = vpop.f32.mrf.mxu0 }
  0xa5   : > { %v330_v45 = vadd.f32 %v849_v34, %v329_v44 }
  0xa7   : > { %v371_v46 = vmax.f32 %v330_v45, 0.0 }
  0xa9   : > { %425 = vmatmul.f32.gmra.mxu1 %v371_v46 }
  0xac   : > { %v332_v47 = vpop.f32.mrf.mxu0 }
  0xad   : > { %v333_v48 = vadd.f32 %v849_v34, %v332_v47 }
  0xaf   : > { %v372_v49 = vmax.f32 %v333_v48, 0.0 }
  0xb1   : > { %428 = vmatmul.f32.gmra.mxu1 %v372_v49 }
  0xb4   : > { %v335_v50 = vpop.f32.mrf.mxu0 }
  0xb5   : > { %v336_v51 = vadd.f32 %v849_v34, %v335_v50 }
  0xb7   : > { %v373_v52 = vmax.f32 %v336_v51, 0.0 }
  0xb9   : > { %431 = vmatmul.f32.gmra.mxu1 %v373_v52 }
  0xbc   : > { %v338_v53 = vpop.f32.mrf.mxu0 }
  0xbd   : > { %v339_v54 = vadd.f32 %v849_v34, %v338_v53 }
  0xbf   : > { %v374_v55 = vmax.f32 %v339_v54, 0.0 }
  0xc1   : > { %434 = vmatmul.f32.gmra.mxu1 %v374_v55 }
  0xc4   : > { %v341_v56 = vpop.f32.mrf.mxu0 }
  0xc5   : > { %v342_v57 = vadd.f32 %v849_v34, %v341_v56 }
  0xc7   : > { %v375_v58 = vmax.f32 %v342_v57, 0.0 }
  0xc9   : > { %437 = vmatmul.f32.gmra.mxu1 %v375_v58 }
  0xcc   : > { %v344_v59 = vpop.f32.mrf.mxu0 }
  0xcd   : > { %v345_v60 = vadd.f32 %v849_v34, %v344_v59 }
  0xcf   : > { %v376_v61 = vmax.f32 %v345_v60, 0.0 }
  0xd1   : > { %440 = vmatmul.f32.gmra.mxu1 %v376_v61 }
  0xd4   : > { %v347_v0 = vpop.f32.mrf.mxu0 }
  0xd5   : > { %v348_v1 = vadd.f32 %v849_v34, %v347_v0 }
  0xd7   : > { %v377_v3 = vmax.f32 %v348_v1, 0.0 }
  0xd9   : > { %443 = vmatmul.f32.gmra.mxu1 %v377_v3 }
  0xdc   : > { %v350_v7 = vpop.f32.mrf.mxu0 }
  0xdd   : > { %v351_v8 = vadd.f32 %v849_v34, %v350_v7 }
  0xdf   : > { %v378_v10 = vmax.f32 %v351_v8, 0.0 }
  0xe1   : > { %446 = vmatmul.f32.gmra.mxu1 %v378_v10 }
  0xe4   : > { %v353_v14 = vpop.f32.mrf.mxu0 }
  0xe5   : > { %v354_v15 = vadd.f32 %v849_v34, %v353_v14 }
  0xe7   : > { %v379_v17 = vmax.f32 %v354_v15, 0.0 }
  0xe9   : > { %449 = vmatmul.f32.gmra.mxu1 %v379_v17 }
  0xec   : > { %v356_v21 = vpop.f32.mrf.mxu0 }
  0xed   : > { %v357_v22 = vadd.f32 %v849_v34, %v356_v21 }
  0xef   : > { %v380_v24 = vmax.f32 %v357_v22, 0.0 }
  0xf1   : > { %452 = vmatmul.f32.vlgmr.msra.gmra.mxu3 %v380_v24 }
  0xf4   : > { %v359_v26 = vpop.f32.mrf.mxu0 }
  0xf5   : > { %v360_v27 = vadd.f32 %v849_v34, %v359_v26 }
  0xf7   : > { %v381_v28 = vmax.f32 %v360_v27, 0.0 }
  0xf9   : > { %455 = vmatmul.f32.gmra.mxu3 %v381_v28 }
  0xfc   : > { %v362_v29 = vpop.f32.mrf.mxu0 }
  0xfd   : > { %v363_v30 = vadd.f32 %v849_v34, %v362_v29 }
  0xff   : > { %v382_v31 = vmax.f32 %v363_v30, 0.0 }
 0x101   : > { %458 = vmatmul.f32.gmra.mxu3 %v382_v31 }
 0x104   : > { %v365_v32 = vpop.f32.mrf.mxu0 }
 0x105   : > { %v366_v33 = vadd.f32 %v849_v34, %v365_v32 }
 0x107   : > { %v383_v35 = vmax.f32 %v366_v33, 0.0 }
 0x109   : > { %461 = vmatmul.f32.gmra.mxu3 %v383_v35 }
 0x10e   : > { %v417_v36 = vpop.f32.mrf.mxu1 }
 0x10f   : > { %v465_v37 = vmax.f32 %v417_v36, 0.0 }
 0x111   : > { %513 = vmatmul.f32.vlgmr.msra.gmra.mxu2 %v465_v37 }
 0x116   : > { %v420_v38 = vpop.f32.mrf.mxu1 }
 0x117   : > { %v466_v39 = vmax.f32 %v420_v38, 0.0 }
 0x119   : > { %516 = vmatmul.f32.gmra.mxu2 %v466_v39 }
 0x11e   : > { %v423_v40 = vpop.f32.mrf.mxu1 }
 0x11f   : > { %v467_v41 = vmax.f32 %v423_v40, 0.0 }
 0x121   : > { %519 = vmatmul.f32.gmra.mxu2 %v467_v41 }
 0x126   : > { %v426_v42 = vpop.f32.mrf.mxu1 }
 0x127   : > { %v468_v43 = vmax.f32 %v426_v42, 0.0 }
 0x129   : > { %522 = vmatmul.f32.gmra.mxu2 %v468_v43 }
 0x12e   : > { %v429_v44 = vpop.f32.mrf.mxu1 }
 0x12f   : > { %v469_v45 = vmax.f32 %v429_v44, 0.0 }
 0x131   : > { %525 = vmatmul.f32.gmra.mxu2 %v469_v45 }
 0x136   : > { %v432_v46 = vpop.f32.mrf.mxu1 }
 0x137   : > { %v470_v47 = vmax.f32 %v432_v46, 0.0 }
 0x139   : > { %528 = vmatmul.f32.gmra.mxu2 %v470_v47 }
 0x13e   : > { %v435_v34 = vpop.f32.mrf.mxu1 }
 0x13f   : > { %v471_v48 = vmax.f32 %v435_v34, 0.0 }
 0x141   : > { %531 = vmatmul.f32.gmra.mxu2 %v471_v48 }
 0x146   : > { %v438_v49 = vpop.f32.mrf.mxu1 }
 0x147   : > { %v472_v50 = vmax.f32 %v438_v49, 0.0 }
 0x149   : > { %534 = vmatmul.f32.gmra.mxu2 %v472_v50 }
 0x14e   : > { %v441_v51 = vpop.f32.mrf.mxu1 }
 0x14f   : > { %v473_v52 = vmax.f32 %v441_v51, 0.0 }
 0x151   : > { %537 = vmatmul.f32.gmra.mxu2 %v473_v52 }
 0x156   : > { %v444_v53 = vpop.f32.mrf.mxu1 }
 0x157   : > { %v474_v54 = vmax.f32 %v444_v53, 0.0 }
 0x159   : > { %540 = vmatmul.f32.gmra.mxu2 %v474_v54 }
 0x15e   : > { %v447_v55 = vpop.f32.mrf.mxu1 }
 0x15f   : > { %v475_v56 = vmax.f32 %v447_v55, 0.0 }
 0x161   : > { %543 = vmatmul.f32.gmra.mxu2 %v475_v56 }
 0x166   : > { %v450_v57 = vpop.f32.mrf.mxu1 }
 0x167   : > { %v476_v58 = vmax.f32 %v450_v57, 0.0 }
 0x169   : > { %546 = vmatmul.f32.gmra.mxu2 %v476_v58 }
 0x174   : > { %v453_v59 = vpop.f32.mrf.mxu3 }
 0x175   : > { %v477_v60 = vmax.f32 %v453_v59, 0.0 }
 0x177   : > { %549 = vmatmul.f32.vlgmr.msrb.gmra.mxu3 %v477_v60 }
 0x17c   : > { %v456_v61 = vpop.f32.mrf.mxu3 }
 0x17d   : > { %v478_v62 = vmax.f32 %v456_v61, 0.0 }
 0x17f   : > { %552 = vmatmul.f32.gmra.mxu3 %v478_v62 }
 0x184   : > { %v459_v63 = vpop.f32.mrf.mxu3 }
 0x185   : > { %v479_v0 = vmax.f32 %v459_v63, 0.0 }
 0x187   : > { %555 = vmatmul.f32.gmra.mxu3 %v479_v0 }
 0x18c   : > { %v462_v1 = vpop.f32.mrf.mxu3 }
 0x18d   : > { %v480_v2 = vmax.f32 %v462_v1, 0.0 }
 0x18f   : > { %558 = vmatmul.f32.gmra.mxu3 %v480_v2 }
 0x194   : > { %v514_v3 = vpop.f32.mrf.mxu2 }
 0x195   : > { %563 = vst.msk [vmem:[%s920_s7] sm:$0xff] %vm562_vm2, %v514_v3 }
 0x19c   : > { %v517_v4 = vpop.f32.mrf.mxu2 }
 0x19d   : > { %564 = vst.msk [vmem:[%s920_s7 + $0x8] sm:$0xff] %vm562_vm2, %v517_v4 }
 0x1a4   : > { %v520_v5 = vpop.f32.mrf.mxu2 }
 0x1a5   : > { %565 = vst.msk [vmem:[%s920_s7 + $0x10] sm:$0xff] %vm562_vm2, %v520_v5 }
 0x1ac   : > { %v523_v6 = vpop.f32.mrf.mxu2 }
 0x1ad   : > { %566 = vst.msk [vmem:[%s920_s7 + $0x18] sm:$0xff] %vm562_vm2, %v523_v6 }
 0x1b4   : > { %v526_v7 = vpop.f32.mrf.mxu2 }
 0x1b5   : > { %567 = vst.msk [vmem:[%s920_s7 + $0x20] sm:$0xff] %vm562_vm2, %v526_v7 }
 0x1bc   : > { %v529_v8 = vpop.f32.mrf.mxu2 }
 0x1bd   : > { %568 = vst.msk [vmem:[%s920_s7 + $0x28] sm:$0xff] %vm562_vm2, %v529_v8 }
 0x1c4   : > { %v532_v9 = vpop.f32.mrf.mxu2 }
 0x1c5   : > { %569 = vst.msk [vmem:[%s920_s7 + $0x30] sm:$0xff] %vm562_vm2, %v532_v9 }
 0x1cc   : > { %v535_v10 = vpop.f32.mrf.mxu2 }
 0x1cd   : > { %570 = vst.msk [vmem:[%s920_s7 + $0x38] sm:$0xff] %vm562_vm2, %v535_v10 }
 0x1d4   : > { %v538_v11 = vpop.f32.mrf.mxu2 }
 0x1d5   : > { %571 = vst.msk [vmem:[%s920_s7 + $0x40] sm:$0xff] %vm562_vm2, %v538_v11 }
 0x1dc   : > { %v541_v12 = vpop.f32.mrf.mxu2 }
 0x1dd   : > { %572 = vst.msk [vmem:[%s920_s7 + $0x48] sm:$0xff] %vm562_vm2, %v541_v12 }
 0x1e4   : > { %v544_v13 = vpop.f32.mrf.mxu2 }
 0x1e5   : > { %573 = vst.msk [vmem:[%s920_s7 + $0x50] sm:$0xff] %vm562_vm2, %v544_v13 }
 0x1ec   : > { %v547_v14 = vpop.f32.mrf.mxu2 }
 0x1ed   : > { %574 = vst.msk [vmem:[%s920_s7 + $0x58] sm:$0xff] %vm562_vm2, %v547_v14 }
 0x1fa   : > { %v550_v15 = vpop.f32.mrf.mxu3 }
 0x1fb   : > { %575 = vst.msk [vmem:[%s920_s7 + $0x60] sm:$0xff] %vm562_vm2, %v550_v15 }
 0x202   : > { %v553_v16 = vpop.f32.mrf.mxu3 }
 0x203   : > { %576 = vst.msk [vmem:[%s920_s7 + $0x68] sm:$0xff] %vm562_vm2, %v553_v16 }
 0x20a   : > { %v556_v17 = vpop.f32.mrf.mxu3 }
 0x20b   : > { %577 = vst.msk [vmem:[%s920_s7 + $0x70] sm:$0xff] %vm562_vm2, %v556_v17 }
 0x212   : > { %v559_v18 = vpop.f32.mrf.mxu3 }
 0x213   : > { %578 = vst.msk [vmem:[%s920_s7 + $0x78] sm:$0xff] %vm562_vm2, %v559_v18 }
 0x214 PF: > { %s15_s18 = sadd.s32 1, %s710_s18  }
 0x215   : > { %p12_p4 = scmp.ge.s32.totalorder %s15_s18, 4  }
 0x217   :  { %14 = sbr.rel (!%p12_p4) target bundleno = 1 (0x1), region = 70 }

</bundles_post_ra>
